<compile_context>
chip_gen: v6e
topology: v6e:2x2x1
jax: 0.10.0
libtpu: 0.0.40
codegen_flags: <defaults>
</compile_context>

<pallas_src>
import functools

import jax
import jax.numpy as jnp
from jax import lax
from jax.experimental import pallas as pl
from jax.experimental.pallas import tpu as pltpu


def _masked_mean_pool(step, len_ref, emb_out_ref, pool_out_ref, *, bt, t, total_b):
    """Length-masked mean over time for every valid batch row of this tile.

    Operates on per-row (t, dp) views of the already-gathered output tile
    (no reshape / relayout), builds only a (t, 1) `iota < len` mask and pools
    with a VPU multiply + sublane reduce (no MXU mask matmul).
    """
    t_iota = lax.broadcasted_iota(jnp.int32, (t, 1), 0)   # hoisted, row-invariant
    for bi in range(bt):                                  # static, small
        b_glob = step * bt + bi

        @pl.when(b_glob < total_b)                        # skip padded rows
        def _(bi=bi, b_glob=b_glob):
            ln = len_ref[b_glob]                          # SMEM scalar
            rows = emb_out_ref[bi].astype(jnp.float32)    # (t, dp) view
            mask = (t_iota < ln).astype(jnp.float32)      # (t, 1)
            pooled = jnp.sum(rows * mask, axis=0, keepdims=True)   # (1, dp)
            # Exact divide (tiny scalar); no approx reciprocal needed.
            pool_out_ref[bi, :, :] = pooled / jnp.maximum(ln.astype(jnp.float32), 1.0)


def _encoder_resident_kernel(tok_ref, len_ref, emb_ref, emb_out_ref, pool_out_ref,
                             *, bt, t, vocab, total_b):
    """VMEM-resident-table path.

    tok_ref  : SMEM (Bp, T) int32   token ids (scalar-prefetched)
    len_ref  : SMEM (Bp,)   int32   per-row valid lengths (scalar-prefetched)
    emb_ref  : VMEM (V, Dp)         embedding table, resident across the grid
    emb_out  : VMEM (bt, T, Dp)     gathered embeddings (output tile)
    pool_out : VMEM (bt, 1, Dp) f32 masked mean over time (output tile)
    """
    step = pl.program_id(0)
    for bi in range(bt):                                  # static, small
        b_glob = step * bt + bi

        @pl.when(b_glob < total_b)                        # skip padded batch rows
        def _(bi=bi, b_glob=b_glob):
            # Gather: dynamic row reads from the resident table straight into
            # the lane-dense output tile. No HBM DMAs on the hot path.
            @pl.loop(0, t)
            def _(ti, bi=bi, b_glob=b_glob):
                # Clamp so a bad id cannot read out of bounds (nn.Embedding
                # would raise instead; padding_idx semantics are not modeled).
                tok = jnp.clip(tok_ref[b_glob, ti], 0, vocab - 1)
                emb_out_ref[bi, pl.ds(ti, 1), :] = emb_ref[pl.ds(tok, 1), :]

    _masked_mean_pool(step, len_ref, emb_out_ref, pool_out_ref,
                      bt=bt, t=t, total_b=total_b)


def _encoder_hbm_gather_kernel(tok_ref, len_ref, emb_hbm, emb_out_ref, pool_out_ref,
                               sem, *, bt, t, vocab, total_b):
    """HBM row-gather fallback for tables that do not fit the VMEM budget.

    One shared DMA semaphore, pl.loop over tokens (no static unroll, no
    per-token semaphore array); padded batch rows issue no descriptors.
    """
    step = pl.program_id(0)
    b_valid = jnp.clip(total_b - step * bt, 0, bt)        # real rows in this tile

    # ---- start all row DMAs on one shared semaphore -------------------------
    for bi in range(bt):                                  # static, small
        @pl.when(bi < b_valid)
        def _(bi=bi):
            @pl.loop(0, t)
            def _(ti, bi=bi):
                tok = jnp.clip(tok_ref[step * bt + bi, ti], 0, vocab - 1)
                pltpu.make_async_copy(
                    emb_hbm.at[pl.ds(tok, 1), :],          # (1, Dp) HBM row
                    emb_out_ref.at[bi, pl.ds(ti, 1), :],   # (1, Dp) VMEM row
                    sem.at[0]).start()

    # ---- wait for all of them (each wait drains one row's worth of bytes) ---
    def _wait(_, carry):
        pltpu.make_async_copy(emb_hbm.at[pl.ds(0, 1), :],
                              emb_out_ref.at[0, pl.ds(0, 1), :],
                              sem.at[0]).wait()
        return carry
    lax.fori_loop(0, b_valid * t, _wait, 0)

    # NOTE: all copies are waited above before emb_out_ref is read below; this
    # ordering must be preserved if the gather is ever pipelined.
    _masked_mean_pool(step, len_ref, emb_out_ref, pool_out_ref,
                      bt=bt, t=t, total_b=total_b)


def seq2seq_encoder(src_tokens, src_lengths, embedding, *, block_b=8,
                    table_vmem_budget_bytes=24 * 2**20):
    """src_tokens: (B, T) int, src_lengths: (B,) int, embedding: (V, D).

    Returns (embedded (B, T, D) in embedding.dtype, pooled (B, D) float32).
    """
    B, T = src_tokens.shape
    V, D = embedding.shape
    dtype = embedding.dtype                    # keep bf16 tables bf16 (no upcast)
    itemsize = jnp.dtype(dtype).itemsize

    # Lane-dense features: pad D up to a multiple of 128 (sliced off at the end).
    Dp = pl.cdiv(D, 128) * 128
    emb_p = embedding if Dp == D else jnp.pad(embedding, ((0, 0), (0, Dp - D)))

    table_bytes = V * Dp * itemsize
    resident = table_bytes <= table_vmem_budget_bytes

    # --- batch tile selection -------------------------------------------------
    bt = max(1, min(block_b, B))
    # Keep the double-buffered embedded output tile modest (v7x has 64 MiB VMEM).
    tile_budget = 8 * 2**20
    while bt > 1 and 2 * bt * T * Dp * itemsize > tile_budget:
        bt = max(1, bt // 2)
    # Megacore (v7x has 2 TensorCores): give the parallel batch axis >= 2 steps.
    if B > 1 and pl.cdiv(B, bt) < 2:
        bt = pl.cdiv(B, 2)

    Bp = pl.cdiv(B, bt) * bt
    tok = src_tokens.astype(jnp.int32)
    lens = src_lengths.astype(jnp.int32)
    if Bp != B:
        tok = jnp.pad(tok, ((0, Bp - B), (0, 0)))
        lens = jnp.pad(lens, (0, Bp - B))
    # NOTE: tokens/lengths are scalar-prefetched into SMEM (2-D (Bp, T) layout
    # keeps padding minimal). For very large B*T they should instead be streamed
    # per grid step via an SMEM-tiled BlockSpec to bound SMEM residency.

    out_shapes = [
        jax.ShapeDtypeStruct((Bp, T, Dp), dtype),        # gathered embeddings
        jax.ShapeDtypeStruct((Bp, 1, Dp), jnp.float32),  # masked mean pool
    ]
    out_specs = [
        pl.BlockSpec((bt, T, Dp), lambda b, tok, lens: (b, 0, 0)),
        pl.BlockSpec((bt, 1, Dp), lambda b, tok, lens: (b, 0, 0)),
    ]

    if resident:
        kernel = functools.partial(_encoder_resident_kernel,
                                   bt=bt, t=T, vocab=V, total_b=B)
        # Constant index_map -> the table is copied to VMEM once and stays
        # resident across all grid steps.
        in_specs = [pl.BlockSpec((V, Dp), lambda b, tok, lens: (0, 0))]
        scratch_shapes = []
    else:
        kernel = functools.partial(_encoder_hbm_gather_kernel,
                                   bt=bt, t=T, vocab=V, total_b=B)
        in_specs = [pl.BlockSpec(memory_space=pl.ANY)]   # table stays in HBM
        scratch_shapes = [pltpu.SemaphoreType.DMA((1,))]  # one shared DMA sem

    # Explicit scoped-VMEM limit: resident table (x2 for safety) + double-
    # buffered output tiles + slack.  Stays at the 32 MiB default for small
    # problems; raised only when actually needed.
    est = ((2 * table_bytes if resident else 0)
           + 2 * bt * T * Dp * itemsize
           + 2 * bt * Dp * 4
           + (1 << 20))
    vmem_limit = int(min(max(est, 32 * 2**20), 112 * 2**20))

    grid_spec = pltpu.PrefetchScalarGridSpec(
        num_scalar_prefetch=2,                 # tokens + lengths live in SMEM
        grid=(Bp // bt,),
        in_specs=in_specs,
        out_specs=out_specs,
        scratch_shapes=scratch_shapes,
    )

    embedded_p, pooled_p = pl.pallas_call(
        kernel,
        out_shape=out_shapes,
        grid_spec=grid_spec,
        compiler_params=pltpu.CompilerParams(
            dimension_semantics=("parallel",),
            vmem_limit_bytes=vmem_limit),
    )(tok, lens, emb_p)

    return embedded_p[:B, :, :D], pooled_p[:B, 0, :D]


if __name__ == "__main__":
    key = jax.random.PRNGKey(0)
    B, T = 2, 8          # batch, sequence length
    V, D = 32, 32        # dictionary size, embedding dim

    k_emb, k_tok = jax.random.split(key)
    embedding = jax.random.normal(k_emb, (V, D), dtype=jnp.float32)
    src_tokens = jax.random.randint(k_tok, (B, T), 0, V, dtype=jnp.int32)
    src_lengths = jnp.array([T, 5], dtype=jnp.int32)

    embedded, pooled = seq2seq_encoder(src_tokens, src_lengths, embedding)
    jax.block_until_ready((embedded, pooled))

    # Pure-JAX reference.
    emb_ref = embedding[src_tokens]                                     # (B, T, D)
    mask = (jnp.arange(T)[None, :] < src_lengths[:, None]).astype(jnp.float32)
    pool_ref = (emb_ref * mask[..., None]).sum(axis=1) / jnp.maximum(
        src_lengths.astype(jnp.float32), 1.0)[:, None]

    assert jnp.allclose(embedded, emb_ref, atol=1e-6), "embedded mismatch"
    assert jnp.allclose(pooled, pool_ref, rtol=1e-5, atol=1e-5), "pooled mismatch"
    print("KERNEL_OK")
</pallas_src>

<mosaic_0001>
module attributes {stable_mosaic.version = 11 : i64} {
  func.func @_encoder_resident_kernel(%arg0: i32, %arg1: memref<2x8xi32, #tpu.memory_space<smem>>, %arg2: memref<2xi32, #tpu.memory_space<smem>>, %arg3: memref<32x128xf32, #tpu.memory_space<vmem>>, %arg4: memref<1x8x128xf32, #tpu.memory_space<vmem>>, %arg5: memref<1x1x128xf32, #tpu.memory_space<vmem>>) attributes {dimension_semantics = [#tpu.dimension_semantics<parallel>], iteration_bounds = array<i64: 2>, scalar_prefetch = 2 : i64, scratch_operands = 0 : i64, tpu.core_type = #tpu.core_type<tc>, window_params = [{pipeline_mode = #tpu.pipeline_mode<synchronous>, transform_indices = @transform_0, window_bounds = array<i64: 32, 128>}, {transform_indices = @transform_1, window_bounds = array<i64: 1, 8, 128>}, {transform_indices = @transform_2, window_bounds = array<i64: 1, 1, 128>}]} {
    %c1_i32 = arith.constant 1 : i32
    %0 = arith.muli %arg0, %c1_i32 : i32
    %c0_i32 = arith.constant 0 : i32
    %1 = arith.addi %0, %c0_i32 : i32
    %c2_i32 = arith.constant 2 : i32
    %2 = arith.cmpi slt, %1, %c2_i32 : i32
    %3 = arith.extui %2 : i1 to i32
    %c0_i32_0 = arith.constant 0 : i32
    %4 = arith.cmpi ne, %3, %c0_i32_0 : i32
    scf.if %4 {
      %c0_i32_5 = arith.constant 0 : i32
      %c8_i32 = arith.constant 8 : i32
      %11 = arith.addi %c0_i32_5, %c8_i32 : i32
      %c1_i32_6 = arith.constant 1 : i32
      scf.for %arg6 = %c0_i32_5 to %11 step %c1_i32_6  : i32 {
        %c1_i32_8 = arith.constant 1 : i32
        %12 = arith.muli %arg6, %c1_i32_8 : i32
        %c0_i32_9 = arith.constant 0 : i32
        %13 = arith.addi %c0_i32_9, %12 : i32
        %14 = arith.index_cast %1 : i32 to index
        %15 = arith.index_cast %13 : i32 to index
        %16 = memref.load %arg1[%14, %15] : memref<2x8xi32, #tpu.memory_space<smem>>
        %c0_i32_10 = arith.constant 0 : i32
        %c31_i32 = arith.constant 31 : i32
        %17 = arith.maxsi %c0_i32_10, %16 : i32
        %18 = arith.minsi %c31_i32, %17 : i32
        %19 = arith.index_cast %18 : i32 to index
        %c0 = arith.constant 0 : index
        %20 = vector.load %arg3[%19, %c0] : memref<32x128xf32, #tpu.memory_space<vmem>>, vector<1x128xf32>
        %c0_11 = arith.constant 0 : index
        %21 = arith.index_cast %13 : i32 to index
        %c0_12 = arith.constant 0 : index
        %22 = vector.load %arg4[%c0_11, %21, %c0_12] : memref<1x8x128xf32, #tpu.memory_space<vmem>>, vector<1x1x128xf32>
        %23 = vector.shape_cast %22 : vector<1x1x128xf32> to vector<1x128xf32>
        %24 = vector.shape_cast %20 : vector<1x128xf32> to vector<1x1x128xf32>
        tpu.vector_store %arg4[%c0_11, %21, %c0_12], %24 {strides = array<i32>} : memref<1x8x128xf32, #tpu.memory_space<vmem>>, vector<1x1x128xf32>,
      }
      %c8_i32_7 = arith.constant 8 : i32
    } else {
    }
    %5 = tpu.iota {dimensions = array<i32: 0>} : vector<8x1xi32>
    %c1_i32_1 = arith.constant 1 : i32
    %6 = arith.muli %arg0, %c1_i32_1 : i32
    %c0_i32_2 = arith.constant 0 : i32
    %7 = arith.addi %6, %c0_i32_2 : i32
    %c2_i32_3 = arith.constant 2 : i32
    %8 = arith.cmpi slt, %7, %c2_i32_3 : i32
    %9 = arith.extui %8 : i1 to i32
    %c0_i32_4 = arith.constant 0 : i32
    %10 = arith.cmpi ne, %9, %c0_i32_4 : i32
    scf.if %10 {
      %11 = arith.index_cast %7 : i32 to index
      %12 = memref.load %arg2[%11] : memref<2xi32, #tpu.memory_space<smem>>
      %c0 = arith.constant 0 : index
      %c0_5 = arith.constant 0 : index
      %c0_6 = arith.constant 0 : index
      %13 = vector.load %arg4[%c0, %c0_5, %c0_6] : memref<1x8x128xf32, #tpu.memory_space<vmem>>, vector<1x8x128xf32>
      %14 = vector.shape_cast %13 : vector<1x8x128xf32> to vector<8x128xf32>
      %15 = vector.broadcast %12 : i32 to vector<8x1xi32>
      %16 = arith.cmpi slt, %5, %15 : vector<8x1xi32>
      %17 = arith.extui %16 : vector<8x1xi1> to vector<8x1xi32>
      %18 = arith.sitofp %17 : vector<8x1xi32> to vector<8x1xf32>
      %19 = vector.broadcast %18 : vector<8x1xf32> to vector<8x128xf32>
      %20 = arith.mulf %14, %19 : vector<8x128xf32>
      %cst = arith.constant dense<0.000000e+00> : vector<128xf32>
      %21 = vector.multi_reduction <add>, %20, %cst [0] : vector<8x128xf32> to vector<128xf32>
      %22 = vector.shape_cast %21 : vector<128xf32> to vector<1x128xf32>
      %23 = arith.sitofp %12 : i32 to f32
      %cst_7 = arith.constant 1.000000e+00 : f32
      %24 = arith.maximumf %23, %cst_7 : f32
      %25 = vector.broadcast %24 : f32 to vector<1x128xf32>
      %26 = arith.divf %22, %25 : vector<1x128xf32>
      %c0_8 = arith.constant 0 : index
      %c0_9 = arith.constant 0 : index
      %c0_10 = arith.constant 0 : index
      %27 = vector.load %arg5[%c0_8, %c0_9, %c0_10] : memref<1x1x128xf32, #tpu.memory_space<vmem>>, vector<1x1x128xf32>
      %28 = vector.shape_cast %27 : vector<1x1x128xf32> to vector<1x128xf32>
      %29 = vector.shape_cast %26 : vector<1x128xf32> to vector<1x1x128xf32>
      tpu.vector_store %arg5[%c0_8, %c0_9, %c0_10], %29 {strides = array<i32>} : memref<1x1x128xf32, #tpu.memory_space<vmem>>, vector<1x1x128xf32>,
    } else {
    }
    return
  }
  func.func @transform_0(%arg0: i32, %arg1: memref<2x8xi32, #tpu.memory_space<smem>>, %arg2: memref<2xi32, #tpu.memory_space<smem>>) -> (i32, i32) {
    %c0_i32 = arith.constant 0 : i32
    %c0_i32_0 = arith.constant 0 : i32
    %c0_i32_1 = arith.constant 0 : i32
    return %c0_i32, %c0_i32_0 : i32, i32
  }
  func.func @transform_1(%arg0: i32, %arg1: memref<2x8xi32, #tpu.memory_space<smem>>, %arg2: memref<2xi32, #tpu.memory_space<smem>>) -> (i32, i32, i32) {
    %c0_i32 = arith.constant 0 : i32
    %c0_i32_0 = arith.constant 0 : i32
    %c0_i32_1 = arith.constant 0 : i32
    return %arg0, %c0_i32, %c0_i32_0 : i32, i32, i32
  }
  func.func @transform_2(%arg0: i32, %arg1: memref<2x8xi32, #tpu.memory_space<smem>>, %arg2: memref<2xi32, #tpu.memory_space<smem>>) -> (i32, i32, i32) {
    %c0_i32 = arith.constant 0 : i32
    %c0_i32_0 = arith.constant 0 : i32
    %c0_i32_1 = arith.constant 0 : i32
    return %arg0, %c0_i32, %c0_i32_0 : i32, i32, i32
  }
}

</mosaic_0001>

<bundles_post_ra>
// kernel: tpu_custom_call.1
= control target key start
LH: loop header
LB: loop body
LE: loop exit
PB: predicated region body
PF: predicated region fallthrough
CT: control target
= control target key end

     0   :  { %s577_s15 = smov [#allocation3]   ;;  %s755_s0 = inlined_call_operand.hbm [shape: s32[2,8], index: 0, kind: input, shape index: {}]   ;;  %s756_s2 = inlined_call_operand.hbm [shape: f32[32,128], index: 2, kind: input, shape index: {}]   ;;  %s757_s3 = inlined_call_operand.hbm [shape: f32[2,8,128], index: 3, kind: output, shape index: {0}]   ;;  %s758_s4 = inlined_call_operand.hbm [shape: f32[2,1,128], index: 4, kind: output, shape index: {1}]   ;;  %s759_s1 = inlined_call_operand.vmem [shape: s32[2], index: 1, kind: input, shape index: {}]  }
   0x1   :  { %11 = dma.hbm_to_smem %s755_s0, 32, %s577_s15, [#allocation2] }
   0x2   :  { %s12_s20 = sshll.u32 %s759_s1, 4  ;;  %s13_s20 = int_to_ptr.vmem [resolvable:$true] %s12_s20 }
   0x3   :  { %s433_s21 = scalar_lea.vmem %s13_s20, 16  ;;  %p438_p1 = scmp.lt.s32.totalorder %s13_s20, %s13_s20 }
   0x4   :  { %p434_p0 = scmp.ne.s32.totalorder %s13_s20, %s433_s21  ;;  %p439_p2 = scmp.lt.s32.totalorder %s433_s21, %s433_s21 }
   0x6   :  { %p440_p3 = por %p439_p2, %p438_p1 }
   0x8   :  { %p441_p4 = pnand %p440_p3, %p434_p0 }
   0xa   :  { %444 = shalt.err (!%p441_p4)  }
   0xb   :  { %s578_s22 = smov [#allocation4]  }
   0xc   :  { %15 = dma.vmem_to_smem %s13_s20, 16, %s578_s22, [#allocation2] }
   0xd   :  { %543 = dma.done.wait [#allocation2], 48 }
   0xe   :  { %544 = vsyncadd [#allocation2], 4294967248 }
   0xf   :  { %17 = sfence }
  0x10   :  { %18 = vsyncpa [#allocation6], 0 }
  0x11   :  { %19 = vsyncpa [#allocation7], 0 }
  0x12   :  { %21 = vsyncpa [#allocation7 + $0x1], 0 }
  0x13   :  { %22 = vsyncpa [#allocation10], 0 }
  0x14   :  { %24 = vsyncpa [#allocation10 + $0x1], 0  ;;  %s617_s0 = smov 0   ;;  %s619_s1 = smov 0  }
  0x15   :  { %s621_s23 = smov 0   ;;  %s623_s24 = smov 0  }
  0x16 LB: > { %s638_s25 = sadd.s32 4294967295, %s571_s24   ;;  %s332_s26 = sadd.s32 4294967294, %s571_s24   ;;  %s571_s24 = sphi %s623_s24, %s767_s24   ;;  %s567_s23 = sphi %s621_s23, %s766_s23   ;;  %s563_s1 = sphi %s619_s1, %s765_s1   ;;  %s559_s0 = sphi %s617_s0, %s764_s0  }
  0x17   : > { %s642_s27 = sadd.s32 1, %s571_s24   ;;  %s58_s28 = sadd.s32 1, %s567_s23 }
  0x18   : > { %s55_s29 = ssub.s32 %s571_s24, %s642_s27  ;;  %p68_p5 = scmp.ne.s32.totalorder %s567_s23, %s563_s1 }
  0x19   : > { %p56_p6 = scmp.eq.s32.totalorder %s55_s29, 0  ;;  %p69_p7 = scmp.eq.s32.totalorder %s638_s25, 1 }
  0x1a   : > { %p74_p8 = scmp.ne.s32.totalorder %s563_s1, %s559_s0  ;;  %p75_p9 = scmp.eq.s32.totalorder %s332_s26, 1 }
  0x1b   : > { %s653_s30 = scalar_select %p56_p6, %s567_s23, %s58_s28  }
  0x1c   : > { %p655_p10 = por %p69_p7, %p68_p5  ;;  %p659_p11 = por %p75_p9, %p74_p8 }
  0x1d   : > { %p333_p12 = scmp.ge.s32.totalorder %s571_s24, 1  ;;  %p108_p13 = scmp.lt.s32.totalorder %s571_s24, 3 }
  0x1e   : > { %s761_s6 = scalar_select %p659_p11, 1, 0 }
  0x1f   : > { %p373_p0 = scmp.eq.s32.totalorder %s638_s25, 0  ;;  %p666_p1 = pnand %p333_p12, %p108_p13 }
  0x20   : > { %s579_s8 = smov [#allocation5]  }
  0x21   : > { %s120_s9 = sshll.u32 %s579_s8, 4  ;;  %p362_p2 = pneg %p666_p1  ;;  %s121_s9 = int_to_ptr.vmem [resolvable:$true] %s120_s9 }
  0x22   : > { %s456_s10 = scalar_lea.vmem %s121_s9, 512  ;;  %p464_p8 = scmp.lt.s32.totalorder %s121_s9, %s121_s9 }
  0x23   : > { %p363_p3 = pnand %p373_p0, %p362_p2  ;;  %p457_p5 = scmp.ne.s32.totalorder %s121_s9, %s456_s10 }
  0x24   : > { %p465_p9 = scmp.lt.s32.totalorder %s456_s10, %s456_s10 }
  0x25   : > { %p447_p4 = pneg %p363_p3 }
  0x26   : > { %p466_p11 = por %p465_p9, %p464_p8 }
  0x27   : > { %p459_p6 = pnand %p457_p5, %p447_p4 }
  0x29   : > { %p460_p7 = pneg %p459_p6 }
  0x2b   : > { %p467_p12 = pnand %p466_p11, %p460_p7 }
  0x2d   : > { %470 = shalt.err (!%p467_p12)
}
  0x2e   : > { %s580_s11 = smov 128   ;;  %s581_s12 = smov 8  }
  0x2f   : > { %365 = dma.hbm_to_vmem [thread:$0]  (!%p363_p3), %s756_s2, 512, %s121_s9, [#allocation6], %s580_s11, %s580_s11, %s581_s12  }
  0x30   : > { %136 = sbr.rel (%p666_p1) target bundleno = 151 (0x97), region = 24 }
  0x35   : > { %546 = dma.done.wait (%p373_p0), [#allocation6], 512  }
  0x36   : > { %548 = vsyncadd (%p373_p0), [#allocation6], 4294966784  ;;  %s684_s15 = sand.u32 1, %s563_s1   ;;  %p338_p11 = scmp.ge.s32.totalorder %s638_s25, 2 }
  0x37   : > { %s337_s16 = sshll.u32 %s684_s15, 3  ;;  %s156_s18 = scalar_lea.vmem [#allocation9], %s684_s15 }
  0x38   : > { %s687_s17 = scalar_lea.vmem [#allocation8], %s337_s16  ;;  %160 = sbr.rel (%p338_p11) target bundleno = 78 (0x4e), region = 32 }
  0x39   : > { %s573_s19 = smov (!%p338_p11), 0  }
  0x3d LB: >> { %s167_s20 = sshra.s32 %s575_s19, 7  ;;  %s172_s21 = sand.u32 127, %s575_s19  ;;  %s575_s19 = sphi %s573_s19, %s166_s19  }
  0x3e   : >> { %s169_s22 = sadd.s32 %s638_s25, %s167_s20  ;;  %s181_s7 = scalar_lea.vmem %s687_s17, %s575_s19 [#allocation8] }
  0x3f   : >> { %s339_s26 = sshll.u32 %s169_s22, 7  ;;  %s166_s19 = sadd.s32 1, %s575_s19  }
  0x40   : >> { %s173_s28 = sadd.s32 %s339_s26, %s172_s21  ;;  %p163_p1 = scmp.ge.s32.totalorder %s166_s19, 8  }
  0x41   : >> { %s174_s29 = sld [smem:[#allocation3 + %s173_s28]] }
  0x47   : >> { %p175_p13 = scmp.gt.s32.totalorder %s174_s29, 0  ;;  %p340_p0 = scmp.lt.s32.totalorder %s174_s29, 31 }
  0x49   : >> { %s769_s29 = smov (!%p175_p13, %s174_s29), 0  ;;  %165 = sbr.rel (!%p163_p1) target bundleno = 61 (0x3d), region = 95 }
  0x4a   : >> { %s771_s29 = smov (!%p340_p0, %s769_s29), 31 }
  0x4b   : >> { %s179_s8 = scalar_lea.vmem [#allocation5], %s771_s29 }
  0x4c   : >> { %v180_v0 = vld [vmem:[%s179_s8] sm:$0x1] }
  0x4d   : >> { %182 = vst [vmem:[%s181_s7] sm:$0x1] %v180_v0 }
  0x4e PF: > { %v183_v1 = vlaneseq  ;;  %187 = sbr.rel (%p338_p11) target bundleno = 105 (0x69), region = 43  ;;  %s188_s9 = sld [smem:[#allocation4 + %s638_s25]] (!%p338_p11) }
  0x4f   : > { %s583_s11 = smov (!%p338_p11), 1.0  }
  0x50   : > { %v184_v2 = vshrl.u32 %v183_v1, 7 }
  0x53   : > { %v582_v5 = vmov 0.0  }
  0x54   : > { %v189_v3 = vld [vmem:[%s687_s17] sm:$0xff]  ;;  %v190_v4 = vstv %s188_s9  ;;  %s201_s10 = scvt.s32.f32 %s188_s9 }
  0x55   : > { %vm191_vm0 = vcmp.lt.s32.totalorder %v184_v2, %v190_v4 }
  0x56   : > { %v346_v6 = vsel %vm191_vm0, 1.0, %v582_v5  ;;  %s202_s12 = smax.f32 %s583_s11, %s201_s10 }
  0x57   : > { %v194_v7 = vmul.f32 %v346_v6, %v189_v3  ;;  %v203_v8 = vstv %s202_s12 }
  0x58   : > { %423 = vrcp.f32 %v203_v8 }
  0x59   : > { %v195_v9 = vrot.slane %v194_v7, 4 }
  0x5b   : > { %v196_v10 = vadd.f32 %v195_v9, %v194_v7 }
  0x5d   : > { %v197_v11 = vrot.slane %v196_v10, 2 }
  0x5f   : > { %v198_v12 = vadd.f32 %v197_v11, %v196_v10 }
  0x61   : > { %v199_v13 = vrot.slane %v198_v12, 1 }
  0x63   : > { %v200_v14 = vadd.f32 %v199_v13, %v198_v12 }
  0x65   : > { %v424_v15 = vpop.eup %423 }
  0x66   : > { %v205_v16 = vmul.f32 %v424_v15, %v200_v14 }
  0x68   : > { %206 = vst [vmem:[%s156_s18] sm:$0x1] %v205_v16 }
  0x69 PF: > { %s348_s13 = sshll.u32 %s638_s25, 7  ;;  %s225_s20 = sshll.u32 %s687_s17, 4  ;;  %s226_s20 = int_to_ptr.vmem [resolvable:$true] %s225_s20 }
  0x6a   : > { %s223_s19 = scalar_lea.hbm %s757_s3, %s348_s13  ;;  %s208_s21 = scalar_lea.sflag [#allocation7], %s684_s15 }
  0x6b   : > { %s471_s22 = scalar_lea.vmem %s226_s20, 128  ;;  %s584_s26 = smov [#allocation8]  }
  0x6c   : > { %p472_p2 = scmp.ne.s32.totalorder %s226_s20, %s471_s22  ;;  %s475_s28 = sshll.u32 %s584_s26, 4  ;;  %s476_s28 = int_to_ptr.vmem [resolvable:$false] %s475_s28 }
  0x6d   : > { %s477_s29 = scalar_lea.vmem %s476_s28, 256  ;;  %p478_p5 = scmp.lt.s32.totalorder %s226_s20, %s476_s28 }
  0x6e   : > { %p473_p3 = pnand %p472_p2, %p655_p10  ;;  %p479_p6 = scmp.lt.s32.totalorder %s477_s29, %s471_s22 }
  0x70   : > { %p474_p4 = pneg %p473_p3  ;;  %p480_p7 = por %p479_p6, %p478_p5 }
  0x72   : > { %p481_p8 = pnand %p480_p7, %p474_p4 }
  0x74   : > { %484 = shalt.err (!%p481_p8)
}
  0x75   : > { %s485_s7 = scalar_lea.hbm %s223_s19, 128  ;;  %s489_s9 = scalar_lea.hbm %s757_s3, 256 }
  0x76   : > { %p486_p9 = scmp.ne.s32.totalorder %s223_s19, %s485_s7  ;;  %p490_p13 = scmp.lt.s32.totalorder %s223_s19, %s757_s3 }
  0x77   : > { %p491_p0 = scmp.lt.s32.totalorder %s489_s9, %s485_s7 }
  0x78   : > { %p487_p12 = pnand %p486_p9, %p655_p10 }
  0x79   : > { %p492_p1 = por %p491_p0, %p490_p13 }
  0x7a   : > { %p488_p11 = pneg %p487_p12 }
  0x7c   : > { %p493_p2 = pnand %p492_p1, %p488_p11 }
  0x7e   : > { %496 = shalt.err (!%p493_p2)
}
  0x7f   : > { %358 = dma.vmem_to_hbm [thread:$0]  (%p655_p10), %s226_s20, 128, %s223_s19, %s208_s21  }
  0x80   : > { %s349_s12 = sshll.u32 %s638_s25, 4  ;;  %s238_s13 = sshll.u32 %s156_s18, 4  ;;  %s239_s13 = int_to_ptr.vmem [resolvable:$true] %s238_s13 }
  0x81   : > { %s236_s22 = scalar_lea.hbm %s758_s4, %s349_s12  ;;  %s213_s26 = scalar_lea.sflag [#allocation10], %s684_s15 }
  0x82   : > { %s497_s28 = scalar_lea.vmem %s239_s13, 16  ;;  %s585_s29 = smov [#allocation9]  }
  0x83   : > { %p498_p3 = scmp.ne.s32.totalorder %s239_s13, %s497_s28  ;;  %s501_s7 = sshll.u32 %s585_s29, 4  ;;  %s502_s7 = int_to_ptr.vmem [resolvable:$false] %s501_s7 }
  0x84   : > { %s503_s17 = scalar_lea.vmem %s502_s7, 32  ;;  %p504_p6 = scmp.lt.s32.totalorder %s239_s13, %s502_s7 }
  0x85   : > { %p499_p4 = pnand %p498_p3, %p655_p10  ;;  %p505_p7 = scmp.lt.s32.totalorder %s503_s17, %s497_s28 }
  0x87   : > { %p500_p5 = pneg %p499_p4  ;;  %p506_p8 = por %p505_p7, %p504_p6 }
  0x89   : > { %p507_p9 = pnand %p506_p8, %p500_p5 }
  0x8b   : > { %510 = shalt.err (!%p507_p9)
}
  0x8c   : > { %s511_s25 = scalar_lea.hbm %s236_s22, 16  ;;  %s515_s19 = scalar_lea.hbm %s758_s4, 32 }
  0x8d   : > { %p512_p12 = scmp.ne.s32.totalorder %s236_s22, %s511_s25  ;;  %p516_p0 = scmp.lt.s32.totalorder %s236_s22, %s758_s4 }
  0x8e   : > { %p517_p1 = scmp.lt.s32.totalorder %s515_s19, %s511_s25 }
  0x8f   : > { %p513_p11 = pnand %p512_p12, %p655_p10 }
  0x90   : > { %p518_p2 = por %p517_p1, %p516_p0 }
  0x91   : > { %p514_p13 = pneg %p513_p11 }
  0x93   : > { %p519_p3 = pnand %p518_p2, %p514_p13 }
  0x95   : > { %522 = shalt.err (!%p519_p3)
}
  0x96   : > { %359 = dma.vmem_to_hbm [thread:$0]  (%p655_p10), %s239_s13, 16, %s236_s22, %s213_s26  }
  0x97 PF: > { %p375_p4 = scmp.ge.s32.totalorder %s571_s24, 2  ;;  %s250_s8 = sand.u32 1, %s559_s0  }
  0x98   : > { %p763_p5 = scmp.ne.s32.totalorder %s761_s6, 0  ;;  %s251_s9 = scalar_lea.sflag [#allocation7], %s250_s8 }
  0x9a   : > { %p367_p6 = pnand %p375_p4, %p763_p5 }
  0x9c   : > { %p368_p7 = pneg %p367_p6 }
  0x9e   : > { %550 = dma.done.wait (%p368_p7), %s251_s9, 128  }
  0x9f   : > { %552 = vsyncadd (%p368_p7), %s251_s9, 4294967168  ;;  %s260_s10 = scalar_lea.sflag [#allocation10], %s250_s8 }
  0xa0   : > { %554 = dma.done.wait (%p368_p7), %s260_s10, 16  }
  0xa1   : > { %556 = vsyncadd (%p368_p7), %s260_s10, 4294967280  ;;  %p27_p10 = scmp.ge.s32.totalorder %s642_s27, 4   ;;  %s764_s0 = smov %s563_s1 }
  0xa2   : > { %s765_s1 = smov %s567_s23  ;;  %s766_s23 = smov %s653_s30 }
  0xa3   : > { %s767_s24 = smov %s642_s27  ;;  %29 = sbr.rel (!%p27_p10) target bundleno = 22 (0x16), region = 106 }
  0xa8   :  { %264 = vsyncpa [#allocation6], 1 }
  0xa9   :  { %266 = vsyncpa [#allocation6 + $0x1], 1 }
  0xaa   :  { %267 = vsyncpa [#allocation7], 1 }
  0xab   :  { %269 = vsyncpa [#allocation7 + $0x1], 1 }
  0xac   :  { %270 = vsyncpa [#allocation10], 1 }
  0xad   :  { %272 = vsyncpa [#allocation10 + $0x1], 1 }

</bundles_post_ra>
